<compile_context>
chip_gen: v6e
topology: v6e:2x2x1
jax: 0.10.0
libtpu: 0.0.40
codegen_flags: <defaults>
</compile_context>

<pallas_src>
import jax
import jax.numpy as jnp
from jax.experimental import pallas as pl
from jax.experimental.pallas import tpu as pltpu


def _round_up(x, m):
    return ((x + m - 1) // m) * m


def patch_embed_kernel(p_ref, w_ref, pos_ref, o_ref):
    # p_ref: (TL, Kp) bf16   w_ref: (Kp, Dp) bf16
    # pos_ref: (TL, Dp) bf16 (bias already folded in)   o_ref: (TL, Dp)
    y = jnp.dot(p_ref[...], w_ref[...], preferred_element_type=jnp.float32)
    o_ref[...] = (y + pos_ref[...].astype(jnp.float32)).astype(o_ref.dtype)


def patch_embed_2d(x, weight, bias, pos, patch_size, mm_dtype=None):
    """x: (B, C, H, W) NCHW; weight: (D, C, ph, pw); bias: (D,); pos: (L, D)."""
    B, C, H, W = x.shape
    D = weight.shape[0]
    ph, pw = patch_size
    Ht, Wt = H // ph, W // pw        # VALID conv: trailing rows/cols dropped
    L = Ht * Wt
    K = C * ph * pw

    out_dtype = x.dtype
    if mm_dtype is None:
        # bf16 operands on the MXU (f32 accumulation); halves the patch DMA.
        # TODO(synk): fp8 patch slab on v7x when the accuracy budget allows.
        mm_dtype = jnp.bfloat16 if x.dtype == jnp.float32 else x.dtype

    # ---- glue: patch extraction (layout only, no compute) -------------------
    # Materialized here, but allow_input_fusion below lets XLA fuse this
    # producer into the pallas_call operand instead of an HBM round trip.
    # TODO(synk): read x directly in-kernel (index_map over patch-row bands) if
    # XLA declines the fusion and the embed stays end-to-end HBM-bound.
    patches = x[:, :, : Ht * ph, : Wt * pw].reshape(B, C, Ht, ph, Wt, pw)
    patches = patches.transpose(0, 2, 4, 1, 3, 5).reshape(B, L, K)
    patches = patches.astype(mm_dtype)

    # Conv weight (D, C, ph, pw) -> (K, D) so that patches @ w == conv output.
    w_mat = weight.reshape(D, K).T.astype(mm_dtype)
    # Fold the bias into the position encoding once; keep it bf16 -> half the
    # epilogue read bytes (the add itself still happens in f32 in-kernel).
    pos_dtype = jnp.bfloat16
    pos_b = (pos.astype(jnp.float32)
             + bias.astype(jnp.float32)[None, :]).astype(pos_dtype)

    # ---- tiling --------------------------------------------------------------
    LANE, SUB = 128, 16
    Dp = _round_up(D, LANE)                       # lane-dense output stores

    # K: pad to 16 (bf16 sublane packing of the (K, Dp) weight); pad to 128
    # (lane dim of the patch tile / MXU contraction) only when growth < 10%,
    # since padded patch bytes are real DMA on a bandwidth-bound kernel.
    Kp = _round_up(K, SUB)
    if _round_up(K, LANE) <= int(K * 1.10):
        Kp = _round_up(K, LANE)

    # Token tile: minimise padding and guarantee >= 2 parallel grid steps so
    # both v7x TensorCores get work even at B == 1.
    nt = pl.cdiv(L, 512)
    while B * nt < 2 and nt < pl.cdiv(L, SUB):
        nt += 1
    TL = _round_up(pl.cdiv(L, nt), SUB)
    Lp = _round_up(L, TL)

    if Dp != D:
        w_mat = jnp.pad(w_mat, ((0, 0), (0, Dp - D)))
        pos_b = jnp.pad(pos_b, ((0, 0), (0, Dp - D)))
    if Kp != K:
        w_mat = jnp.pad(w_mat, ((0, Kp - K), (0, 0)))
        patches = jnp.pad(patches, ((0, 0), (0, 0), (0, Kp - K)))
    if Lp != L:
        patches = jnp.pad(patches, ((0, 0), (0, Lp - L), (0, 0)))
        pos_b = jnp.pad(pos_b, ((0, Lp - L), (0, 0)))

    # Batch innermost: pos/weight block indices are unchanged across
    # consecutive steps -> Pallas skips their re-DMA.
    grid = (Lp // TL, B)

    mm_bytes = jnp.dtype(mm_dtype).itemsize
    pos_bytes = jnp.dtype(pos_dtype).itemsize
    out_bytes = jnp.dtype(out_dtype).itemsize

    # Per-step VMEM footprint (double-buffered streams + weight buffers); v7x
    # only has 64 MiB physical VMEM so don't blanket-ask for 48 MiB.
    # TODO(synk): single-buffer the weight (pipeline_mode=pl.Buffered(1)) if
    # the 2nd Kp*Dp buffer ever matters; its re-DMA is already skipped.
    vmem_need = (2 * TL * Kp * mm_bytes + 2 * TL * Dp * pos_bytes
                 + 2 * TL * Dp * out_bytes + 2 * Kp * Dp * mm_bytes)
    vmem_limit = int(min(48 << 20, max(16 << 20, 2 * vmem_need + (4 << 20))))

    cost = pl.CostEstimate(
        flops=2 * B * Lp * Kp * Dp,
        bytes_accessed=(B * Lp * Kp * mm_bytes     # patch slab, read once
                        + Kp * Dp * mm_bytes       # weight, fetched once
                        + Lp * Dp * pos_bytes      # pos+bias, once per l tile
                        + B * Lp * Dp * out_bytes),
        transcendentals=0)

    out = pl.pallas_call(
        patch_embed_kernel,
        out_shape=jax.ShapeDtypeStruct((B, Lp, Dp), out_dtype),
        grid=grid,
        in_specs=[
            pl.BlockSpec((None, TL, Kp), lambda l, b: (b, l, 0)),  # patch tile
            pl.BlockSpec((Kp, Dp), lambda l, b: (0, 0)),           # shared weight
            pl.BlockSpec((TL, Dp), lambda l, b: (l, 0)),           # bias+pos tile
        ],
        out_specs=pl.BlockSpec((None, TL, Dp), lambda l, b: (b, l, 0)),
        compiler_params=pltpu.CompilerParams(
            dimension_semantics=("parallel", "parallel"),
            allow_input_fusion=[True, False, False],
            vmem_limit_bytes=vmem_limit),
        cost_estimate=cost,
    )(patches, w_mat, pos_b)

    if Lp != L or Dp != D:
        out = out[:, :L, :D]
    return out


def fourier_position_encoding(key, tokenized_size, hidden_size):
    # TODO(synk): reference FourierPositionEncoder implementation not provided;
    # using standard random Fourier features over normalized (h, w) grid coords.
    ht, wt = tokenized_size
    yy, xx = jnp.meshgrid(jnp.linspace(-1.0, 1.0, ht),
                          jnp.linspace(-1.0, 1.0, wt), indexing="ij")
    coords = jnp.stack([yy.ravel(), xx.ravel()], axis=-1)            # (L, 2)
    bmat = jax.random.normal(key, (2, hidden_size // 2), jnp.float32)
    proj = 2.0 * jnp.pi * coords @ bmat                              # (L, D/2)
    return jnp.concatenate([jnp.sin(proj), jnp.cos(proj)], axis=-1)  # (L, D)


def reference(x, weight, bias, pos, patch_size):
    # Plain-JAX f32 reference: strided conv == patch matmul.
    y = jax.lax.conv_general_dilated(
        x.astype(jnp.float32), weight.astype(jnp.float32),
        window_strides=patch_size, padding="VALID",
        dimension_numbers=("NCHW", "OIHW", "NCHW"))
    y = y + bias.reshape(1, -1, 1, 1)
    B, D, Ht, Wt = y.shape
    y = y.reshape(B, D, Ht * Wt).transpose(0, 2, 1)
    return y + pos[None]


def reference_mxu_rounded(x, weight, bias, pos, patch_size):
    # Mirrors the kernel's roundings exactly: bf16 matmul operands, f32
    # accumulation, bf16-rounded (bias + pos) epilogue.
    xb = x.astype(jnp.bfloat16).astype(jnp.float32)
    wb = weight.astype(jnp.bfloat16).astype(jnp.float32)
    y = jax.lax.conv_general_dilated(
        xb, wb, window_strides=patch_size, padding="VALID",
        dimension_numbers=("NCHW", "OIHW", "NCHW"))
    B, D, Ht, Wt = y.shape
    y = y.reshape(B, D, Ht * Wt).transpose(0, 2, 1)
    pos_b = (pos.astype(jnp.float32) + bias.astype(jnp.float32)[None, :]
             ).astype(jnp.bfloat16).astype(jnp.float32)
    return y + pos_b[None]


if __name__ == "__main__":
    # Small shapes consistent with the module.
    B, C, H, W = 2, 4, 16, 16
    patch_size = (4, 4)
    hidden = 32
    Ht, Wt = H // patch_size[0], W // patch_size[1]

    key = jax.random.PRNGKey(0)
    kx, kw, kb, kp = jax.random.split(key, 4)

    x = jax.random.normal(kx, (B, C, H, W), jnp.float32)
    # Deterministic "Conv2d.reset_parameters"-style init (Kaiming-uniform bound).
    fan_in = C * patch_size[0] * patch_size[1]
    bound = 1.0 / (fan_in ** 0.5)
    weight = jax.random.uniform(kw, (hidden, C, *patch_size), jnp.float32,
                                minval=-bound, maxval=bound)
    bias = jax.random.uniform(kb, (hidden,), jnp.float32,
                              minval=-bound, maxval=bound)
    pos = fourier_position_encoding(kp, (Ht, Wt), hidden)

    out = jax.block_until_ready(patch_embed_2d(x, weight, bias, pos, patch_size))
    assert out.shape == (B, Ht * Wt, hidden), out.shape

    # Exact-rounding reference (same bf16 operand / bf16 pos rounding, f32 acc).
    ref_tight = reference_mxu_rounded(x, weight, bias, pos, patch_size)
    assert jnp.allclose(out, ref_tight, atol=1e-4, rtol=1e-4), \
        float(jnp.max(jnp.abs(out - ref_tight)))

    # Loose sanity check against the full-f32 reference (bf16 rounding only).
    ref_f32 = reference(x, weight, bias, pos, patch_size)
    assert jnp.allclose(out, ref_f32, atol=1e-1, rtol=1e-1), \
        float(jnp.max(jnp.abs(out - ref_f32)))

    print("KERNEL_OK")
</pallas_src>

<mosaic_0001>
module attributes {stable_mosaic.version = 11 : i64} {
  func.func @patch_embed_kernel(%arg0: i32, %arg1: i32, %arg2: memref<1x16x64xbf16, #tpu.memory_space<vmem>>, %arg3: memref<64x128xbf16, #tpu.memory_space<vmem>>, %arg4: memref<16x128xbf16, #tpu.memory_space<vmem>>, %arg5: memref<1x16x128xf32, #tpu.memory_space<vmem>>) attributes {dimension_semantics = [#tpu.dimension_semantics<parallel>, #tpu.dimension_semantics<parallel>], iteration_bounds = array<i64: 1, 2>, scalar_prefetch = 0 : i64, scratch_operands = 0 : i64, tpu.core_type = #tpu.core_type<tc>, window_params = [{transform_indices = @transform_0, window_bounds = array<i64: 1, 16, 64>}, {pipeline_mode = #tpu.pipeline_mode<synchronous>, transform_indices = @transform_1, window_bounds = array<i64: 64, 128>}, {transform_indices = @transform_2, window_bounds = array<i64: 16, 128>}, {transform_indices = @transform_3, window_bounds = array<i64: 1, 16, 128>}]} {
    %c0 = arith.constant 0 : index
    %c0_0 = arith.constant 0 : index
    %c0_1 = arith.constant 0 : index
    %0 = vector.load %arg2[%c0, %c0_0, %c0_1] : memref<1x16x64xbf16, #tpu.memory_space<vmem>>, vector<1x16x64xbf16>
    %1 = vector.shape_cast %0 : vector<1x16x64xbf16> to vector<16x64xbf16>
    %c0_2 = arith.constant 0 : index
    %c0_3 = arith.constant 0 : index
    %2 = vector.load %arg3[%c0_2, %c0_3] : memref<64x128xbf16, #tpu.memory_space<vmem>>, vector<64x128xbf16>
    %cst = arith.constant dense<0.000000e+00> : vector<16x128xf32>
    %3 = tpu.matmul %1, %2, %cst {dimension_numbers = #tpu.dot_dimension_numbers<[1], [0], [0], [1], [0, 0, 1, 1], [], []>} : vector<16x64xbf16>, vector<64x128xbf16>, vector<16x128xf32> -> vector<16x128xf32>
    %c0_4 = arith.constant 0 : index
    %c0_5 = arith.constant 0 : index
    %4 = vector.load %arg4[%c0_4, %c0_5] : memref<16x128xbf16, #tpu.memory_space<vmem>>, vector<16x128xbf16>
    %5 = arith.extf %4 : vector<16x128xbf16> to vector<16x128xf32>
    %6 = arith.addf %3, %5 : vector<16x128xf32>
    %c0_6 = arith.constant 0 : index
    %c0_7 = arith.constant 0 : index
    %c0_8 = arith.constant 0 : index
    %7 = vector.load %arg5[%c0_6, %c0_7, %c0_8] : memref<1x16x128xf32, #tpu.memory_space<vmem>>, vector<1x16x128xf32>
    %8 = vector.shape_cast %7 : vector<1x16x128xf32> to vector<16x128xf32>
    %9 = vector.shape_cast %6 : vector<16x128xf32> to vector<1x16x128xf32>
    tpu.vector_store %arg5[%c0_6, %c0_7, %c0_8], %9 {strides = array<i32>} : memref<1x16x128xf32, #tpu.memory_space<vmem>>, vector<1x16x128xf32>,
    return
  }
  func.func @transform_0(%arg0: i32, %arg1: i32) -> (i32, i32, i32) {
    %c0_i32 = arith.constant 0 : i32
    %c0_i32_0 = arith.constant 0 : i32
    return %arg1, %arg0, %c0_i32 : i32, i32, i32
  }
  func.func @transform_1(%arg0: i32, %arg1: i32) -> (i32, i32) {
    %c0_i32 = arith.constant 0 : i32
    %c0_i32_0 = arith.constant 0 : i32
    %c0_i32_1 = arith.constant 0 : i32
    return %c0_i32, %c0_i32_0 : i32, i32
  }
  func.func @transform_2(%arg0: i32, %arg1: i32) -> (i32, i32) {
    %c0_i32 = arith.constant 0 : i32
    %c0_i32_0 = arith.constant 0 : i32
    return %arg0, %c0_i32 : i32, i32
  }
  func.func @transform_3(%arg0: i32, %arg1: i32) -> (i32, i32, i32) {
    %c0_i32 = arith.constant 0 : i32
    %c0_i32_0 = arith.constant 0 : i32
    return %arg1, %arg0, %c0_i32 : i32, i32, i32
  }
}

</mosaic_0001>

<bundles_post_ra>
// kernel: tpu_custom_call.1
= control target key start
LH: loop header
LB: loop body
LE: loop exit
PB: predicated region body
PF: predicated region fallthrough
CT: control target
= control target key end

     0   :  { %8 = vsyncpa [#allocation3], 0  ;;  %s998_s0 = inlined_call_operand.hbm [shape: bf16[2,16,64], index: 0, kind: input, shape index: {}]   ;;  %s999_s1 = inlined_call_operand.hbm [shape: bf16[64,128], index: 1, kind: input, shape index: {}]   ;;  %s1000_s2 = inlined_call_operand.hbm [shape: bf16[16,128], index: 2, kind: input, shape index: {}]   ;;  %s1001_s3 = inlined_call_operand.hbm [shape: f32[2,16,128], index: 3, kind: output, shape index: {}]  }
   0x1   :  { %10 = vsyncpa [#allocation3 + $0x1], 0 }
   0x2   :  { %11 = vsyncpa [#allocation6], 0 }
   0x3   :  { %12 = vsyncpa [#allocation4], 0 }
   0x4   :  { %14 = vsyncpa [#allocation4 + $0x1], 0  ;;  %s800_s12 = smov 0   ;;  %s802_s13 = smov 0  }
   0x5   :  { %s804_s14 = smov 0   ;;  %s806_s15 = smov 0  }
   0x6   :  { %s808_s16 = smov 0   ;;  %s810_s17 = smov 0  }
   0x7 LB: > { %s462_s18 = sadd.s32 4294967295, %s768_s17   ;;  %s463_s19 = sadd.s32 4294967294, %s768_s17   ;;  %s768_s17 = sphi %s810_s17, %s20_s17   ;;  %s764_s16 = sphi %s808_s16, %s1018_s16   ;;  %s760_s15 = sphi %s806_s15, %s1017_s15   ;;  %s756_s14 = sphi %s804_s14, %s1016_s14   ;;  %s752_s13 = sphi %s802_s13, %s1015_s13   ;;  %s748_s12 = sphi %s800_s12, %s1014_s12  }
   0x8   : > { %p54_p0 = scmp.ne.s32.totalorder %s752_s13, %s748_s12  ;;  %p834_p1 = scmp.eq.s32.totalorder %s462_s18, 0 }
   0x9   : > { %p838_p2 = scmp.eq.s32.totalorder %s462_s18, 1  ;;  %p133_p3 = scmp.eq.s32.totalorder %s463_s19, 1 }
   0xa   : > { %p844_p4 = por %p834_p1, %p54_p0  ;;  %p464_p5 = scmp.ge.s32.totalorder %s768_s17, 1 }
   0xb   : > { %p849_p6 = por %p133_p3, %p54_p0  ;;  %p140_p7 = scmp.lt.s32.totalorder %s768_s17, 3 }
   0xc   : > { %s770_s25 = smov [#allocation5]   ;;  %s771_s28 = smov [#allocation7]  }
   0xd   : > { %s1006_s23 = scalar_select %p849_p6, 1, 0 }
   0xe   : > { %p854_p8 = pnand %p464_p5, %p140_p7  ;;  %s152_s26 = sshll.u32 %s770_s25, 4  ;;  %s153_s26 = int_to_ptr.vmem [resolvable:$true] %s152_s26 }
   0xf   : > { %s168_s29 = sshll.u32 %s771_s28, 4  ;;  %s615_s30 = scalar_lea.vmem %s153_s26, 512  ;;  %s169_s29 = int_to_ptr.vmem [resolvable:$true] %s168_s29 }
  0x10   : > { %p522_p9 = pneg %p854_p8  ;;  %p616_p13 = scmp.ne.s32.totalorder %s153_s26, %s615_s30 }
  0x11   : > { %p623_p5 = scmp.lt.s32.totalorder %s153_s26, %s153_s26  ;;  %p624_p7 = scmp.lt.s32.totalorder %s615_s30, %s615_s30 }
  0x12   : > { %p863_p11 = pnand %p522_p9, %p834_p1 }
  0x13   : > { %p625_p10 = por %p624_p7, %p623_p5 }
  0x14   : > { %p606_p12 = pneg %p863_p11 }
  0x16   : > { %p618_p0 = pnand %p616_p13, %p606_p12 }
  0x18   : > { %p619_p3 = pneg %p618_p0 }
  0x1a   : > { %p626_p9 = pnand %p625_p10, %p619_p3 }
  0x1c   : > { %629 = shalt.err (!%p626_p9)
}
  0x1d   : > { %s1002_s4 = smov 64   ;;  %s773_s5 = smov 4  }
  0x1e   : > { %525 = dma.hbm_to_vmem [thread:$0]  (!%p863_p11), %s999_s1, 512, %s153_s26, [#allocation6], %s1002_s4, %s1002_s4, %s773_s5  }
  0x1f   : > { %s641_s8 = scalar_lea.vmem %s169_s29, 128  ;;  %p649_p10 = scmp.lt.s32.totalorder %s169_s29, %s169_s29 }
  0x20   : > { %p642_p13 = scmp.ne.s32.totalorder %s169_s29, %s641_s8  ;;  %p650_p3 = scmp.lt.s32.totalorder %s641_s8, %s641_s8 }
  0x22   : > { %p644_p0 = pnand %p642_p13, %p606_p12  ;;  %p651_p7 = por %p650_p3, %p649_p10 }
  0x24   : > { %p645_p5 = pneg %p644_p0 }
  0x26   : > { %p652_p9 = pnand %p651_p7, %p645_p5 }
  0x28   : > { %655 = shalt.err (!%p652_p9)
}
  0x29   : > { %528 = dma.hbm_to_vmem [thread:$0]  (!%p863_p11), %s1000_s2, 128, %s169_s29, [#allocation6], %s1002_s4, %s1002_s4, %s773_s5  }
  0x2a   : > { %s29_s11 = sadd.s32 1, %s764_s16  ;;  %s41_s18 = sadd.s32 1, %s756_s14 }
  0x2b   : > { %p30_p12 = scmp.ge.s32.totalorder %s29_s11, 2  ;;  %p48_p13 = scmp.ne.s32.totalorder %s756_s14, %s752_s13 }
  0x2c   : > { %p49_p0 = scmp.eq.s32.totalorder %s768_s17, 0  ;;  %p539_p5 = scmp.lt.s32.totalorder %s768_s17, 2 }
  0x2d   : > { %s1020_s11 = smov (%p30_p12, %s29_s11), 0  ;;  %p901_p3 = por %p838_p2, %p48_p13 }
  0x2e   : > { %p50_p10 = por %p49_p0, %p48_p13  ;;  %s36_s25 = ssub.s32 %s764_s16, %s1020_s11 }
  0x2f   : > { %s182_s26 = sand.u32 1, %s756_s14   ;;  %p39_p7 = scmp.eq.s32.totalorder %s36_s25, 0 }
  0x30   : > { %s468_s27 = sshll.u32 %s182_s26, 3  ;;  %s487_s28 = sshll.u32 %s764_s16, 7 }
  0x31   : > { %s910_s29 = scalar_select %p39_p7, %s756_s14, %s41_s18  }
  0x32   : > { %s194_s7 = scalar_lea.hbm %s998_s0, %s487_s28  ;;  %s186_s8 = scalar_lea.vmem [#allocation2], %s468_s27 }
  0x33   : > { %s195_s9 = sshll.u32 %s186_s8, 4  ;;  %p917_p11 = pnand %p539_p5, %p50_p10  ;;  %s196_s9 = int_to_ptr.vmem [resolvable:$true] %s195_s9 }
  0x34   : > { %s183_s10 = scalar_lea.sflag [#allocation3], %s182_s26  ;;  %s669_s25 = scalar_lea.vmem %s196_s9, 128 }
  0x35   : > { %p658_p2 = pneg %p917_p11  ;;  %p670_p9 = scmp.ne.s32.totalorder %s196_s9, %s669_s25 }
  0x36   : > { %s774_s18 = smov [#allocation2]  }
  0x37   : > { %p672_p12 = pnand %p670_p9, %p658_p2  ;;  %s674_s4 = sshll.u32 %s774_s18, 4  ;;  %s675_s4 = int_to_ptr.vmem [resolvable:$false] %s674_s4 }
  0x38   : > { %s676_s28 = scalar_lea.vmem %s675_s4, 256  ;;  %p677_p0 = scmp.lt.s32.totalorder %s196_s9, %s675_s4 }
  0x39   : > { %p673_p13 = pneg %p672_p12  ;;  %p678_p7 = scmp.lt.s32.totalorder %s676_s28, %s669_s25 }
  0x3b   : > { %p679_p6 = por %p678_p7, %p677_p0 }
  0x3d   : > { %p680_p5 = pnand %p679_p6, %p673_p13 }
  0x3f   : > { %683 = shalt.err (!%p680_p5)
}
  0x40   : > { %s1011_s27 = smov 64   ;;  %207 = sbr.rel (%p854_p8) target bundleno = 302 (0x12e), region = 32 }
  0x41   : > { %532 = dma.hbm_to_vmem [thread:$0]  (!%p917_p11), %s194_s7, 128, %s196_s9, %s183_s10, %s1011_s27, %s1011_s27, %s773_s5  }
  0x42   : > { %s931_s26 = sand.u32 (!%p854_p8), 1, %s752_s13  }
  0x43   : > { %s472_s4 = sshll.u32 (!%p854_p8), %s931_s26, 3  ;;  %s210_s30 = scalar_lea.sflag (!%p854_p8), [#allocation3], %s931_s26 }
  0x44   : > { %s213_s6 = scalar_lea.vmem (!%p854_p8), [#allocation2], %s472_s4 }
  0x45   : > { %735 = dma.done.wait (%p844_p4), %s210_s30, 128  }
  0x46   : > { %737 = vsyncadd (%p844_p4), %s210_s30, 4294967168 }
  0x47   : > { %739 = dma.done.wait (%p834_p1), [#allocation6], 640  }
  0x48   : > { %741 = vsyncadd (%p834_p1), [#allocation6], 4294966656  ;;  %v775_v0 = vmov 0.0   ;;  %vm776_vm0 = vmmov 0   ;;  %v599_v1 = vld [vmem:[#allocation5 + $0x18] sm:$0xff]   ;;  %v600_v2 = vld [vmem:[#allocation5 + $0x10] sm:$0xff]  }
  0x49   : > { %498 = vmatprep.subr.bf16.mxu0 %v775_v0  ;;  %506 = vmatprep.mubr.msk.bf16.mxu0 %vm776_vm0, %v775_v0  ;;  %v601_v3 = vld [vmem:[#allocation5 + $0x8] sm:$0xff]   ;;  %v602_v4 = vld [vmem:[#allocation5] sm:$0xff]   ;;  %v603_v5 = vld [vmem:[%s213_s6] sm:$0xff]   ;;  %vm291_vm1 = vcmask 523264   ;;  %s475_s20 = sshll.u32 %s931_s26, 4  ;;  %s488_s5 = sshll.u32 %s760_s15, 8 }
  0x4a   : > { %499 = vmatpush3.bf16.msra.mxu0 %v599_v1  ;;  %v490_v6 = vld [vmem:[#allocation7] sm:$0xff]   ;;  %s243_s22 = scalar_lea.vmem [#allocation8], %s475_s20  ;;  %s950_s9 = scalar_lea.hbm %s1001_s3, %s488_s5 }
  0x4b   : > { %500 = vmatprep.subr.bf16.mxu0 %v775_v0  ;;  %v491_v7 = vunpack.c.l.bf16 %v490_v6  ;;  %s354_s24 = sshll.u32 %s243_s22, 4  ;;  %v492_v10 = vunpack.c.h.bf16 %v490_v6  ;;  %s339_s21 = scalar_lea.sflag [#allocation4], %s931_s26  ;;  %s945_s24 = int_to_ptr.vmem [resolvable:$true] %s354_s24 }
  0x4c   : > { %s684_s10 = scalar_lea.vmem %s945_s24, 256  ;;  %s777_s15 = smov [#allocation8]  }
  0x4d   : > { %p685_p1 = scmp.ne.s32.totalorder %s945_s24, %s684_s10  ;;  %s688_s25 = sshll.u32 %s777_s15, 4  ;;  %s689_s25 = int_to_ptr.vmem [resolvable:$false] %s688_s25 }
  0x4e   : > { %501 = vmatpush3.bf16.msra.mxu0 %v600_v2  ;;  %s690_s18 = scalar_lea.vmem %s689_s25, 512  ;;  %p691_p8 = scmp.lt.s32.totalorder %s945_s24, %s689_s25 }
  0x4f   : > { %502 = vmatprep.subr.bf16.mxu0 %v775_v0  ;;  %p686_p4 = pnand %p685_p1, %p901_p3  ;;  %p692_p10 = scmp.lt.s32.totalorder %s690_s18, %s684_s10 }
  0x51   : > { %p687_p6 = pneg %p686_p4  ;;  %p693_p11 = por %p692_p10, %p691_p8 }
  0x52   : > { %503 = vmatpush3.bf16.msra.mxu0 %v601_v3 }
  0x53   : > { %504 = vmatprep.subr.bf16.mxu0 %v775_v0  ;;  %p694_p2 = pnand %p693_p11, %p687_p6 }
  0x56   : > { %505 = vmatpush3.bf16.msra.mxu0 %v602_v4 }
  0x59   : > { %507 = vmatmul.mubr.msk.bf16.vlgmr.msra.gmra.mxu0 %vm291_vm1, %v603_v5 }
 0x119   : > { %v329_v8 = vpop.f32.mrf.mxu0 }
 0x11a   : > { %v330_v9 = vadd.f32 %v491_v7, %v329_v8 }
 0x11b   : > { %v508_v11 = vpop.f32.mrf.mxu0 }
 0x11c   : > { %336 = vst [vmem:[%s243_s22] sm:$0xff] %v330_v9 }
 0x11d   : > { %v332_v12 = vpop.f32.mrf.mxu0 }
 0x11e   : > { %v333_v13 = vadd.f32 %v492_v10, %v332_v12 }
 0x11f   : > { %v509_v14 = vpop.f32.mrf.mxu0 }
 0x120   : > { %337 = vst [vmem:[%s243_s22 + $0x8] sm:$0xff] %v333_v13 }
 0x121   : > { %697 = shalt.err (!%p694_p2)
}
 0x122   : > { %s698_s28 = scalar_lea.hbm %s950_s9, 256  ;;  %s702_s30 = scalar_lea.hbm %s1001_s3, 512 }
 0x123   : > { %p699_p9 = scmp.ne.s32.totalorder %s950_s9, %s698_s28  ;;  %p703_p0 = scmp.lt.s32.totalorder %s950_s9, %s1001_s3 }
 0x124   : > { %p704_p7 = scmp.lt.s32.totalorder %s702_s30, %s698_s28 }
 0x125   : > { %p700_p12 = pnand %p699_p9, %p901_p3 }
 0x126   : > { %p705_p5 = por %p704_p7, %p703_p0 }
 0x127   : > { %p701_p13 = pneg %p700_p12 }
 0x129   : > { %p706_p1 = pnand %p705_p5, %p701_p13 }
 0x12b   : > { %709 = shalt.err (!%p706_p1)
}
 0x12c   : > { %s778_s22 = smov 128   ;;  %s779_s5 = smov 8  }
 0x12d   : > { %520 = dma.vmem_to_hbm [thread:$0]  (%p901_p3), %s945_s24, 256, %s950_s9, %s339_s21, %s778_s22, %s778_s22, %s779_s5  }
 0x12e PF: > { %s369_s7 = sand.u32 1, %s748_s12   ;;  %p1012_p4 = scmp.ne.s32.totalorder %s1006_s23, 0 }
 0x12f   : > { %p1013_p6 = scmp.ge.s32.totalorder %s768_s17, 2  ;;  %s370_s8 = scalar_lea.sflag [#allocation4], %s369_s7 }
 0x131   : > { %p534_p8 = pnand %p1013_p6, %p1012_p4 }
 0x133   : > { %p535_p10 = pneg %p534_p8 }
 0x135   : > { %743 = dma.done.wait (%p535_p10), %s370_s8, 256  }
 0x136   : > { %745 = vsyncadd (%p535_p10), %s370_s8, 4294967040  ;;  %s20_s17 = sadd.s32 1, %s768_s17   ;;  %s1014_s12 = smov %s752_s13 }
 0x137   : > { %p17_p11 = scmp.ge.s32.totalorder %s20_s17, 4   ;;  %s1015_s13 = smov %s756_s14 }
 0x138   : > { %s1016_s14 = smov %s910_s29  ;;  %s1017_s15 = smov %s764_s16 }
 0x139   : > { %s1018_s16 = smov %s1020_s11  ;;  %19 = sbr.rel (!%p17_p11) target bundleno = 7 (0x7), region = 86 }
 0x13e   :  { %375 = vsyncpa [#allocation3], 1 }
 0x13f   :  { %377 = vsyncpa [#allocation3 + $0x1], 1 }
 0x140   :  { %378 = vsyncpa [#allocation6], 1 }
 0x141   :  { %379 = vsyncpa [#allocation4], 1 }
 0x142   :  { %381 = vsyncpa [#allocation4 + $0x1], 1 }

</bundles_post_ra>
